<compile_context>
chip_gen: v6e
topology: v6e:2x2x1
jax: 0.10.0
libtpu: 0.0.40
codegen_flags: <defaults>
</compile_context>

<pallas_src>
import functools

import jax
import jax.numpy as jnp
from jax.experimental import pallas as pl
from jax.experimental.pallas import tpu as pltpu

EPS = 1e-5


# ----------------------------- kernel bodies ------------------------------ #

def stage1_kernel(x_ref, s1_ref, b1_ref, t1_ref, cb1_ref,
                  y1_ref, st_ref, a_scr, *, mm_dtype):
    """BN1 affine -> ReLU -> 3x3 conv (3 block-Toeplitz matmuls) + BN2 partials."""
    nb, H, WCi = x_ref.shape
    WCo = y1_ref.shape[-1]

    # BN1 affine + ReLU on the whole (nb, H, W*Cin) block (f32 elementwise).
    act = jnp.maximum(x_ref[...] * s1_ref[...] + b1_ref[...], 0.0)

    # Vertical-only zero padding: exactly 2 rows per item are zeroed each step
    # (no full-scratch zeroing; horizontal taps live in the Toeplitz RHS).
    zrow = jnp.zeros((nb, 1, WCi), jnp.float32)
    a_scr[:, 0:1, :] = zrow
    a_scr[:, H + 1:H + 2, :] = zrow
    a_scr[:, 1:H + 1, :] = act

    a_mid = act.reshape(nb * H, WCi).astype(mm_dtype)
    a_up = a_scr[:, 0:H, :].reshape(nb * H, WCi).astype(mm_dtype)      # row h -> act[h-1]
    a_dn = a_scr[:, 2:H + 2, :].reshape(nb * H, WCi).astype(mm_dtype)  # row h -> act[h+1]

    # 3 MXU matmuls, f32 accumulation, output directly lane-dense (nb*H, W*Cout).
    y = (jnp.dot(a_up, t1_ref[0], preferred_element_type=jnp.float32)
         + jnp.dot(a_mid, t1_ref[1], preferred_element_type=jnp.float32)
         + jnp.dot(a_dn, t1_ref[2], preferred_element_type=jnp.float32)
         + cb1_ref[...])
    y3 = y.reshape(nb, H, WCo)
    y1_ref[...] = y3                                   # lane-dense store

    # BN2 partials: per-(item, packed column) sum and centered sum-of-squares
    # over the H rows (group size H) -> numerically stable Chan combine in the
    # wrapper (avoids the E[y^2]-E[y]^2 cancellation).
    s = jnp.sum(y3, axis=1)                            # (nb, W*Cout)
    d = y3 - (s * (1.0 / H))[:, None, :]
    m2 = jnp.sum(d * d, axis=1)                        # (nb, W*Cout)
    st_ref[:, 0:1, :] = s[:, None, :]
    st_ref[:, 1:2, :] = m2[:, None, :]


def stage2_kernel(y1_ref, x_ref, s2_ref, b2_ref, t2_ref, cb2_ref,
                  wsk_ref, bsk_ref, o_ref, a_scr, *, mm_dtype):
    """BN2 affine -> ReLU -> 3x3 conv + recomputed 1x1 skip (BN3 folded) + add."""
    nb, H, WCo = y1_ref.shape
    WCi = x_ref.shape[-1]

    act = jnp.maximum(y1_ref[...] * s2_ref[...] + b2_ref[...], 0.0)

    zrow = jnp.zeros((nb, 1, WCo), jnp.float32)
    a_scr[:, 0:1, :] = zrow
    a_scr[:, H + 1:H + 2, :] = zrow
    a_scr[:, 1:H + 1, :] = act

    a_mid = act.reshape(nb * H, WCo).astype(mm_dtype)
    a_up = a_scr[:, 0:H, :].reshape(nb * H, WCo).astype(mm_dtype)
    a_dn = a_scr[:, 2:H + 2, :].reshape(nb * H, WCo).astype(mm_dtype)

    y2 = (jnp.dot(a_up, t2_ref[0], preferred_element_type=jnp.float32)
          + jnp.dot(a_mid, t2_ref[1], preferred_element_type=jnp.float32)
          + jnp.dot(a_dn, t2_ref[2], preferred_element_type=jnp.float32)
          + cb2_ref[...])

    # Skip branch recomputed from x (Cin <= Cout, cheaper than a skip_raw HBM
    # round-trip); BN3 is already folded into wsk/bsk in the wrapper.
    skip = (jnp.dot(x_ref[...].reshape(nb * H, WCi).astype(mm_dtype), wsk_ref[...],
                    preferred_element_type=jnp.float32) + bsk_ref[...])

    o_ref[...] = (y2 + skip).reshape(nb, H, WCo)       # lane-dense store


# ----------------------------- pallas wrappers ----------------------------- #

def _vmem_limit(block_bytes, weight_bytes, scratch_bytes):
    need = 2 * block_bytes + weight_bytes + scratch_bytes + (2 << 20)
    return int(min(max(2 * need, 8 << 20), 48 << 20))   # v7x-safe headroom cap


def _pick_nb(N, H, W, C):
    """Largest divisor of N such that the per-step activation slab stays small."""
    per_item = H * W * C * 4
    nb = max(1, min(N, (4 << 20) // max(per_item, 1)))
    while N % nb:
        nb -= 1
    return nb


def _stage1(xp, s1t, b1t, T1, cb1t, *, nb, H, W, Cin, Cout, mm_dtype):
    N = xp.shape[0]
    WCi, WCo = W * Cin, W * Cout
    blk_bytes = 4 * (nb * H * WCi + nb * H * WCo + nb * 2 * WCo)
    w_bytes = int(T1.size) * T1.dtype.itemsize + 4 * (2 * WCi + WCo)
    scr_bytes = 4 * nb * (H + 2) * WCi
    flops = int(2 * N * H * 3 * WCi * WCo)
    bytes_acc = int(4 * (N * H * WCi + N * H * WCo + N * 2 * WCo) + w_bytes)
    return pl.pallas_call(
        functools.partial(stage1_kernel, mm_dtype=mm_dtype),
        out_shape=(jax.ShapeDtypeStruct((N, H, WCo), jnp.float32),   # y1
                   jax.ShapeDtypeStruct((N, 2, WCo), jnp.float32)),  # BN2 partials
        grid=(N // nb,),
        in_specs=[pl.BlockSpec((nb, H, WCi), lambda i: (i, 0, 0)),
                  pl.BlockSpec((1, WCi), lambda i: (0, 0)),
                  pl.BlockSpec((1, WCi), lambda i: (0, 0)),
                  pl.BlockSpec((3, WCi, WCo), lambda i: (0, 0, 0)),
                  pl.BlockSpec((1, WCo), lambda i: (0, 0))],
        out_specs=[pl.BlockSpec((nb, H, WCo), lambda i: (i, 0, 0)),
                   pl.BlockSpec((nb, 2, WCo), lambda i: (i, 0, 0))],
        scratch_shapes=[pltpu.VMEM((nb, H + 2, WCi), jnp.float32)],
        compiler_params=pltpu.CompilerParams(
            dimension_semantics=("parallel",),
            vmem_limit_bytes=_vmem_limit(blk_bytes, w_bytes, scr_bytes)),
        cost_estimate=pl.CostEstimate(flops=flops, transcendentals=0,
                                      bytes_accessed=bytes_acc),
    )(xp, s1t, b1t, T1, cb1t)


def _stage2(y1p, xp, s2t, b2t, T2, cb2t, Wsk, bskt,
            *, nb, H, W, Cin, Cout, mm_dtype):
    N = y1p.shape[0]
    WCi, WCo = W * Cin, W * Cout
    blk_bytes = 4 * (nb * H * WCo + nb * H * WCi + nb * H * WCo)
    w_bytes = (int(T2.size) * T2.dtype.itemsize + int(Wsk.size) * Wsk.dtype.itemsize
               + 4 * 4 * WCo)
    scr_bytes = 4 * nb * (H + 2) * WCo
    flops = int(2 * N * H * (3 * WCo * WCo + WCi * WCo))
    bytes_acc = int(4 * (2 * N * H * WCo + N * H * WCi) + w_bytes)
    return pl.pallas_call(
        functools.partial(stage2_kernel, mm_dtype=mm_dtype),
        out_shape=jax.ShapeDtypeStruct((N, H, WCo), jnp.float32),
        grid=(N // nb,),
        in_specs=[pl.BlockSpec((nb, H, WCo), lambda i: (i, 0, 0)),
                  pl.BlockSpec((nb, H, WCi), lambda i: (i, 0, 0)),
                  pl.BlockSpec((1, WCo), lambda i: (0, 0)),
                  pl.BlockSpec((1, WCo), lambda i: (0, 0)),
                  pl.BlockSpec((3, WCo, WCo), lambda i: (0, 0, 0)),
                  pl.BlockSpec((1, WCo), lambda i: (0, 0)),
                  pl.BlockSpec((WCi, WCo), lambda i: (0, 0)),
                  pl.BlockSpec((1, WCo), lambda i: (0, 0))],
        out_specs=pl.BlockSpec((nb, H, WCo), lambda i: (i, 0, 0)),
        scratch_shapes=[pltpu.VMEM((nb, H + 2, WCo), jnp.float32)],
        compiler_params=pltpu.CompilerParams(
            dimension_semantics=("parallel",),
            vmem_limit_bytes=_vmem_limit(blk_bytes, w_bytes, scr_bytes)),
        cost_estimate=pl.CostEstimate(flops=flops, transcendentals=0,
                                      bytes_accessed=bytes_acc),
    )(y1p, xp, s2t, b2t, T2, cb2t, Wsk, bskt)


# ------------------------------- JAX glue ---------------------------------- #

def _tile(v, W):
    return jnp.tile(v.astype(jnp.float32), W)[None, :]


def _toeplitz_rhs(w_hwio, W):
    """(3,3,Ci,Co) conv weights -> (3, W*Ci, W*Co) block-Toeplitz RHS (one per
    vertical tap); horizontal zero-padding is implicit (out-of-range taps drop)."""
    KH, KW, Ci, Co = w_hwio.shape
    wi = jnp.arange(W)[:, None]
    wo = jnp.arange(W)[None, :]
    kx = wi - wo + 1                                    # (W, W)
    valid = (kx >= 0) & (kx < KW)
    kxc = jnp.clip(kx, 0, KW - 1)
    blk = w_hwio[:, kxc, :, :]                          # (KH, W, W, Ci, Co)
    blk = blk * valid[None, :, :, None, None].astype(w_hwio.dtype)
    return blk.transpose(0, 1, 3, 2, 4).reshape(KH, W * Ci, W * Co)


def _blockdiag_rhs(w_io, W):
    """(Ci,Co) 1x1-conv weights -> (W*Ci, W*Co) block-diagonal RHS."""
    Ci, Co = w_io.shape
    eye = jnp.eye(W, dtype=w_io.dtype)
    return jnp.einsum("ab,ic->aibc", eye, w_io).reshape(W * Ci, W * Co)


def residual_conv_forward(x_nchw, p, *, matmul_dtype=jnp.float32):
    # matmul_dtype=jnp.bfloat16 gives ~2x MXU throughput on v5e/v6e/v7x (f32
    # accumulation, elementwise stays f32); costs ~1e-2 absolute error.
    x = jnp.transpose(x_nchw, (0, 2, 3, 1)).astype(jnp.float32)      # -> NHWC
    N, H, W, Cin = x.shape
    Cout = p["w1"].shape[-1]
    cnt = N * H * W
    hi = jax.lax.Precision.HIGHEST

    # ---- BN1 (training-mode batch stats) + Cov(x) for analytic BN3 ----------
    m1 = jnp.mean(x, axis=(0, 1, 2))
    xc = (x - m1).reshape(cnt, Cin)
    cov = jnp.einsum("nc,nd->cd", xc, xc, precision=hi) / cnt        # biased
    v1 = jnp.diagonal(cov)
    s1 = p["g1"] * jax.lax.rsqrt(v1 + EPS)
    b1 = p["be1"] - m1 * s1

    # ---- BN3 folded analytically into the 1x1 skip conv ---------------------
    # skip = x @ w_skip + b_skip  =>  mean = m1@w+b,  var = diag(wᵀ Cov(x) w).
    w_sk, b_sk = p["w_skip"], p["b_skip"]
    m_sk = m1 @ w_sk + b_sk
    v_sk = jnp.einsum("ic,ij,jc->c", w_sk, cov, w_sk, precision=hi)
    s3 = p["g3"] * jax.lax.rsqrt(v_sk + EPS)
    w_sk_f = w_sk * s3[None, :]
    b_sk_f = b_sk * s3 + p["be3"] - m_sk * s3

    # ---- packed / Toeplitz weights ------------------------------------------
    T1 = _toeplitz_rhs(p["w1"], W).astype(matmul_dtype)      # (3, W*Cin, W*Cout)
    T2 = _toeplitz_rhs(p["w2"], W).astype(matmul_dtype)      # (3, W*Cout, W*Cout)
    Wsk = _blockdiag_rhs(w_sk_f, W).astype(matmul_dtype)     # (W*Cin, W*Cout)

    x_packed = x.reshape(N, H, W * Cin)                      # lane-dense packing
    nb = _pick_nb(N, H, W, max(Cin, Cout))

    y1p, st = _stage1(x_packed, _tile(s1, W), _tile(b1, W), T1, _tile(p["cb1"], W),
                      nb=nb, H=H, W=W, Cin=Cin, Cout=Cout, mm_dtype=matmul_dtype)

    # ---- BN2 stats: Chan combine of per-(item, column) centered partials ----
    s_g = st[:, 0, :].reshape(N, W, Cout)
    m2_g = st[:, 1, :].reshape(N, W, Cout)
    mean2 = jnp.sum(s_g, axis=(0, 1)) / cnt
    mu_g = s_g * (1.0 / H)
    M2 = jnp.sum(m2_g, axis=(0, 1)) + jnp.sum(H * (mu_g - mean2) ** 2, axis=(0, 1))
    v2 = M2 / cnt                                            # biased variance
    s2 = p["g2"] * jax.lax.rsqrt(v2 + EPS)
    b2 = p["be2"] - mean2 * s2

    out_p = _stage2(y1p, x_packed, _tile(s2, W), _tile(b2, W), T2, _tile(p["cb2"], W),
                    Wsk, _tile(b_sk_f, W),
                    nb=nb, H=H, W=W, Cin=Cin, Cout=Cout, mm_dtype=matmul_dtype)

    return jnp.transpose(out_p.reshape(N, H, W, Cout), (0, 3, 1, 2))  # -> NCHW


# ---------------------------- pure-JAX reference --------------------------- #

def ref_forward(x_nchw, p):
    x = jnp.transpose(x_nchw, (0, 2, 3, 1)).astype(jnp.float32)

    def bn(t, g, be):
        m = t.mean(axis=(0, 1, 2))
        v = t.var(axis=(0, 1, 2))
        return (t - m) / jnp.sqrt(v + EPS) * g + be

    def conv(t, w_hwio, b, pad):
        out = jax.lax.conv_general_dilated(
            t, w_hwio, window_strides=(1, 1), padding=pad,
            dimension_numbers=("NHWC", "HWIO", "NHWC"))
        return out + b

    a1 = jax.nn.relu(bn(x, p["g1"], p["be1"]))
    y1 = conv(a1, p["w1"], p["cb1"], [(1, 1), (1, 1)])
    a2 = jax.nn.relu(bn(y1, p["g2"], p["be2"]))
    y2 = conv(a2, p["w2"], p["cb2"], [(1, 1), (1, 1)])
    skip = bn(conv(x, p["w_skip"][None, None], p["b_skip"], [(0, 0), (0, 0)]),
              p["g3"], p["be3"])
    return jnp.transpose(y2 + skip, (0, 3, 1, 2))


# ---------------------------------- main ----------------------------------- #

if __name__ == "__main__":
    N, Cin, H, W = 2, 4, 16, 16
    Cout = 8                                     # W*Cout = 128 -> lane-dense I/O

    key = jax.random.PRNGKey(0)
    ks = jax.random.split(key, 12)
    x = jax.random.normal(ks[0], (N, Cin, H, W), jnp.float32)

    params = {
        # conv_block: BN(Cin) -> ReLU -> Conv3x3(Cin,Cout) -> BN(Cout) -> ReLU -> Conv3x3(Cout,Cout)
        "g1":  1.0 + 0.1 * jax.random.normal(ks[1], (Cin,), jnp.float32),
        "be1": 0.1 * jax.random.normal(ks[2], (Cin,), jnp.float32),
        "w1":  0.3 * jax.random.normal(ks[3], (3, 3, Cin, Cout), jnp.float32),   # HWIO
        "cb1": 0.1 * jax.random.normal(ks[4], (Cout,), jnp.float32),
        "g2":  1.0 + 0.1 * jax.random.normal(ks[5], (Cout,), jnp.float32),
        "be2": 0.1 * jax.random.normal(ks[6], (Cout,), jnp.float32),
        "w2":  0.3 * jax.random.normal(ks[7], (3, 3, Cout, Cout), jnp.float32),  # HWIO
        "cb2": 0.1 * jax.random.normal(ks[8], (Cout,), jnp.float32),
        # conv_skip: Conv1x1(Cin,Cout) -> BN(Cout)
        "w_skip": 0.3 * jax.random.normal(ks[9], (Cin, Cout), jnp.float32),
        "b_skip": 0.1 * jax.random.normal(ks[10], (Cout,), jnp.float32),
        "g3":  1.0 + 0.1 * jax.random.normal(ks[11], (Cout,), jnp.float32),
        "be3": jnp.zeros((Cout,), jnp.float32),
    }

    out = jax.block_until_ready(residual_conv_forward(x, params))
    ref = ref_forward(x, params)

    assert out.shape == (N, Cout, H, W), out.shape
    err = float(jnp.max(jnp.abs(out - ref)))
    if err < 1e-3:
        print("KERNEL_OK")
    else:
        print(f"MISMATCH max_abs_err={err}")
</pallas_src>

<mosaic_0001>
module attributes {stable_mosaic.version = 11 : i64} {
  func.func @stage1_kernel(%arg0: i32, %arg1: memref<2x16x64xf32, #tpu.memory_space<vmem>>, %arg2: memref<1x64xf32, #tpu.memory_space<vmem>>, %arg3: memref<1x64xf32, #tpu.memory_space<vmem>>, %arg4: memref<3x64x128xf32, #tpu.memory_space<vmem>>, %arg5: memref<1x128xf32, #tpu.memory_space<vmem>>, %arg6: memref<2x16x128xf32, #tpu.memory_space<vmem>>, %arg7: memref<2x2x128xf32, #tpu.memory_space<vmem>>, %arg8: memref<2x18x64xf32, #tpu.memory_space<vmem>>) attributes {dimension_semantics = [#tpu.dimension_semantics<parallel>], iteration_bounds = array<i64: 1>, scalar_prefetch = 0 : i64, scratch_operands = 1 : i64, tpu.core_type = #tpu.core_type<tc>, window_params = [{transform_indices = @transform_0, window_bounds = array<i64: 2, 16, 64>}, {pipeline_mode = #tpu.pipeline_mode<synchronous>, transform_indices = @transform_1, window_bounds = array<i64: 1, 64>}, {pipeline_mode = #tpu.pipeline_mode<synchronous>, transform_indices = @transform_2, window_bounds = array<i64: 1, 64>}, {pipeline_mode = #tpu.pipeline_mode<synchronous>, transform_indices = @transform_3, window_bounds = array<i64: 3, 64, 128>}, {pipeline_mode = #tpu.pipeline_mode<synchronous>, transform_indices = @transform_4, window_bounds = array<i64: 1, 128>}, {transform_indices = @transform_5, window_bounds = array<i64: 2, 16, 128>}, {transform_indices = @transform_6, window_bounds = array<i64: 2, 2, 128>}]} {
    %c0 = arith.constant 0 : index
    %c0_0 = arith.constant 0 : index
    %c0_1 = arith.constant 0 : index
    %0 = vector.load %arg1[%c0, %c0_0, %c0_1] : memref<2x16x64xf32, #tpu.memory_space<vmem>>, vector<2x16x64xf32>
    %c0_2 = arith.constant 0 : index
    %c0_3 = arith.constant 0 : index
    %1 = vector.load %arg2[%c0_2, %c0_3] : memref<1x64xf32, #tpu.memory_space<vmem>>, vector<1x64xf32>
    %2 = vector.shape_cast %1 : vector<1x64xf32> to vector<1x1x64xf32>
    %3 = vector.broadcast %2 : vector<1x1x64xf32> to vector<2x16x64xf32>
    %4 = arith.mulf %0, %3 : vector<2x16x64xf32>
    %c0_4 = arith.constant 0 : index
    %c0_5 = arith.constant 0 : index
    %5 = vector.load %arg3[%c0_4, %c0_5] : memref<1x64xf32, #tpu.memory_space<vmem>>, vector<1x64xf32>
    %6 = vector.shape_cast %5 : vector<1x64xf32> to vector<1x1x64xf32>
    %7 = vector.broadcast %6 : vector<1x1x64xf32> to vector<2x16x64xf32>
    %8 = arith.addf %4, %7 : vector<2x16x64xf32>
    %cst = arith.constant 0.000000e+00 : f32
    %9 = vector.broadcast %cst : f32 to vector<2x16x64xf32>
    %10 = arith.maximumf %8, %9 : vector<2x16x64xf32>
    %cst_6 = arith.constant 0.000000e+00 : f32
    %11 = vector.broadcast %cst_6 : f32 to vector<2x1x64xf32>
    %c0_7 = arith.constant 0 : index
    %c0_8 = arith.constant 0 : index
    %c0_9 = arith.constant 0 : index
    %12 = vector.load %arg8[%c0_7, %c0_8, %c0_9] : memref<2x18x64xf32, #tpu.memory_space<vmem>>, vector<2x1x64xf32>
    tpu.vector_store %arg8[%c0_7, %c0_8, %c0_9], %11 {strides = array<i32>} : memref<2x18x64xf32, #tpu.memory_space<vmem>>, vector<2x1x64xf32>,
    %c0_10 = arith.constant 0 : index
    %c17 = arith.constant 17 : index
    %c0_11 = arith.constant 0 : index
    %13 = vector.load %arg8[%c0_10, %c17, %c0_11] : memref<2x18x64xf32, #tpu.memory_space<vmem>>, vector<2x1x64xf32>
    tpu.vector_store %arg8[%c0_10, %c17, %c0_11], %11 {strides = array<i32>} : memref<2x18x64xf32, #tpu.memory_space<vmem>>, vector<2x1x64xf32>,
    %c0_12 = arith.constant 0 : index
    %c1 = arith.constant 1 : index
    %c0_13 = arith.constant 0 : index
    %14 = vector.load %arg8[%c0_12, %c1, %c0_13] : memref<2x18x64xf32, #tpu.memory_space<vmem>>, vector<2x16x64xf32>
    tpu.vector_store %arg8[%c0_12, %c1, %c0_13], %10 {strides = array<i32>} : memref<2x18x64xf32, #tpu.memory_space<vmem>>, vector<2x16x64xf32>,
    %15 = vector.shape_cast %10 : vector<2x16x64xf32> to vector<32x64xf32>
    %c0_14 = arith.constant 0 : index
    %c0_15 = arith.constant 0 : index
    %c0_16 = arith.constant 0 : index
    %16 = vector.load %arg8[%c0_14, %c0_15, %c0_16] : memref<2x18x64xf32, #tpu.memory_space<vmem>>, vector<2x16x64xf32>
    %17 = vector.shape_cast %16 : vector<2x16x64xf32> to vector<32x64xf32>
    %c0_17 = arith.constant 0 : index
    %c2 = arith.constant 2 : index
    %c0_18 = arith.constant 0 : index
    %18 = vector.load %arg8[%c0_17, %c2, %c0_18] : memref<2x18x64xf32, #tpu.memory_space<vmem>>, vector<2x16x64xf32>
    %19 = vector.shape_cast %18 : vector<2x16x64xf32> to vector<32x64xf32>
    %c0_19 = arith.constant 0 : index
    %c0_20 = arith.constant 0 : index
    %c0_21 = arith.constant 0 : index
    %20 = vector.load %arg4[%c0_19, %c0_20, %c0_21] : memref<3x64x128xf32, #tpu.memory_space<vmem>>, vector<1x64x128xf32>
    %21 = vector.shape_cast %20 : vector<1x64x128xf32> to vector<64x128xf32>
    %cst_22 = arith.constant dense<0.000000e+00> : vector<32x128xf32>
    %22 = tpu.matmul %17, %21, %cst_22 {dimension_numbers = #tpu.dot_dimension_numbers<[1], [0], [0], [1], [0, 0, 1, 1], [], []>} : vector<32x64xf32>, vector<64x128xf32>, vector<32x128xf32> -> vector<32x128xf32>
    %c1_23 = arith.constant 1 : index
    %c0_24 = arith.constant 0 : index
    %c0_25 = arith.constant 0 : index
    %23 = vector.load %arg4[%c1_23, %c0_24, %c0_25] : memref<3x64x128xf32, #tpu.memory_space<vmem>>, vector<1x64x128xf32>
    %24 = vector.shape_cast %23 : vector<1x64x128xf32> to vector<64x128xf32>
    %cst_26 = arith.constant dense<0.000000e+00> : vector<32x128xf32>
    %25 = tpu.matmul %15, %24, %cst_26 {dimension_numbers = #tpu.dot_dimension_numbers<[1], [0], [0], [1], [0, 0, 1, 1], [], []>} : vector<32x64xf32>, vector<64x128xf32>, vector<32x128xf32> -> vector<32x128xf32>
    %26 = arith.addf %22, %25 : vector<32x128xf32>
    %c2_27 = arith.constant 2 : index
    %c0_28 = arith.constant 0 : index
    %c0_29 = arith.constant 0 : index
    %27 = vector.load %arg4[%c2_27, %c0_28, %c0_29] : memref<3x64x128xf32, #tpu.memory_space<vmem>>, vector<1x64x128xf32>
    %28 = vector.shape_cast %27 : vector<1x64x128xf32> to vector<64x128xf32>
    %cst_30 = arith.constant dense<0.000000e+00> : vector<32x128xf32>
    %29 = tpu.matmul %19, %28, %cst_30 {dimension_numbers = #tpu.dot_dimension_numbers<[1], [0], [0], [1], [0, 0, 1, 1], [], []>} : vector<32x64xf32>, vector<64x128xf32>, vector<32x128xf32> -> vector<32x128xf32>
    %30 = arith.addf %26, %29 : vector<32x128xf32>
    %c0_31 = arith.constant 0 : index
    %c0_32 = arith.constant 0 : index
    %31 = vector.load %arg5[%c0_31, %c0_32] : memref<1x128xf32, #tpu.memory_space<vmem>>, vector<1x128xf32>
    %32 = vector.broadcast %31 : vector<1x128xf32> to vector<32x128xf32>
    %33 = arith.addf %30, %32 : vector<32x128xf32>
    %34 = vector.shape_cast %33 : vector<32x128xf32> to vector<2x16x128xf32>
    %c0_33 = arith.constant 0 : index
    %c0_34 = arith.constant 0 : index
    %c0_35 = arith.constant 0 : index
    %35 = vector.load %arg6[%c0_33, %c0_34, %c0_35] : memref<2x16x128xf32, #tpu.memory_space<vmem>>, vector<2x16x128xf32>
    tpu.vector_store %arg6[%c0_33, %c0_34, %c0_35], %34 {strides = array<i32>} : memref<2x16x128xf32, #tpu.memory_space<vmem>>, vector<2x16x128xf32>,
    %cst_36 = arith.constant dense<0.000000e+00> : vector<2x128xf32>
    %36 = vector.multi_reduction <add>, %34, %cst_36 [1] : vector<2x16x128xf32> to vector<2x128xf32>
    %cst_37 = arith.constant 6.250000e-02 : f32
    %37 = vector.broadcast %cst_37 : f32 to vector<2x128xf32>
    %38 = arith.mulf %36, %37 : vector<2x128xf32>
    %39 = vector.shape_cast %38 : vector<2x128xf32> to vector<2x1x128xf32>
    %40 = vector.broadcast %39 : vector<2x1x128xf32> to vector<2x16x128xf32>
    %41 = arith.subf %34, %40 : vector<2x16x128xf32>
    %42 = arith.mulf %41, %41 : vector<2x16x128xf32>
    %cst_38 = arith.constant dense<0.000000e+00> : vector<2x128xf32>
    %43 = vector.multi_reduction <add>, %42, %cst_38 [1] : vector<2x16x128xf32> to vector<2x128xf32>
    %44 = vector.shape_cast %36 : vector<2x128xf32> to vector<2x1x128xf32>
    %c0_39 = arith.constant 0 : index
    %c0_40 = arith.constant 0 : index
    %c0_41 = arith.constant 0 : index
    %45 = vector.load %arg7[%c0_39, %c0_40, %c0_41] : memref<2x2x128xf32, #tpu.memory_space<vmem>>, vector<2x1x128xf32>
    tpu.vector_store %arg7[%c0_39, %c0_40, %c0_41], %44 {strides = array<i32>} : memref<2x2x128xf32, #tpu.memory_space<vmem>>, vector<2x1x128xf32>,
    %46 = vector.shape_cast %43 : vector<2x128xf32> to vector<2x1x128xf32>
    %c0_42 = arith.constant 0 : index
    %c1_43 = arith.constant 1 : index
    %c0_44 = arith.constant 0 : index
    %47 = vector.load %arg7[%c0_42, %c1_43, %c0_44] : memref<2x2x128xf32, #tpu.memory_space<vmem>>, vector<2x1x128xf32>
    tpu.vector_store %arg7[%c0_42, %c1_43, %c0_44], %46 {strides = array<i32>} : memref<2x2x128xf32, #tpu.memory_space<vmem>>, vector<2x1x128xf32>,
    return
  }
  func.func @transform_0(%arg0: i32) -> (i32, i32, i32) {
    %c0_i32 = arith.constant 0 : i32
    %c0_i32_0 = arith.constant 0 : i32
    %c0_i32_1 = arith.constant 0 : i32
    return %arg0, %c0_i32, %c0_i32_0 : i32, i32, i32
  }
  func.func @transform_1(%arg0: i32) -> (i32, i32) {
    %c0_i32 = arith.constant 0 : i32
    %c0_i32_0 = arith.constant 0 : i32
    %c0_i32_1 = arith.constant 0 : i32
    return %c0_i32, %c0_i32_0 : i32, i32
  }
  func.func @transform_2(%arg0: i32) -> (i32, i32) {
    %c0_i32 = arith.constant 0 : i32
    %c0_i32_0 = arith.constant 0 : i32
    %c0_i32_1 = arith.constant 0 : i32
    return %c0_i32, %c0_i32_0 : i32, i32
  }
  func.func @transform_3(%arg0: i32) -> (i32, i32, i32) {
    %c0_i32 = arith.constant 0 : i32
    %c0_i32_0 = arith.constant 0 : i32
    %c0_i32_1 = arith.constant 0 : i32
    %c0_i32_2 = arith.constant 0 : i32
    return %c0_i32, %c0_i32_0, %c0_i32_1 : i32, i32, i32
  }
  func.func @transform_4(%arg0: i32) -> (i32, i32) {
    %c0_i32 = arith.constant 0 : i32
    %c0_i32_0 = arith.constant 0 : i32
    %c0_i32_1 = arith.constant 0 : i32
    return %c0_i32, %c0_i32_0 : i32, i32
  }
  func.func @transform_5(%arg0: i32) -> (i32, i32, i32) {
    %c0_i32 = arith.constant 0 : i32
    %c0_i32_0 = arith.constant 0 : i32
    %c0_i32_1 = arith.constant 0 : i32
    return %arg0, %c0_i32, %c0_i32_0 : i32, i32, i32
  }
  func.func @transform_6(%arg0: i32) -> (i32, i32, i32) {
    %c0_i32 = arith.constant 0 : i32
    %c0_i32_0 = arith.constant 0 : i32
    %c0_i32_1 = arith.constant 0 : i32
    return %arg0, %c0_i32, %c0_i32_0 : i32, i32, i32
  }
}

</mosaic_0001>

<bundles_post_ra>
// kernel: tpu_custom_call.1
= control target key start
LH: loop header
LB: loop body
LE: loop exit
PB: predicated region body
PF: predicated region fallthrough
CT: control target
= control target key end

     0   :  { %12 = vsyncpa [#allocation4], 0  ;;  %s832_s0 = inlined_call_operand.hbm [shape: f32[2,16,64], index: 0, kind: input, shape index: {}]   ;;  %s833_s1 = inlined_call_operand.vmem [shape: f32[1,64], index: 1, kind: input, shape index: {}]   ;;  %s834_s2 = inlined_call_operand.vmem [shape: f32[1,64], index: 2, kind: input, shape index: {}]   ;;  %s835_s3 = inlined_call_operand.hbm [shape: f32[3,64,128], index: 3, kind: input, shape index: {}]   ;;  %s836_s4 = inlined_call_operand.vmem [shape: f32[1,128], index: 4, kind: input, shape index: {}]   ;;  %s837_s5 = inlined_call_operand.hbm [shape: f32[2,16,128], index: 5, kind: output, shape index: {0}]   ;;  %s838_s6 = inlined_call_operand.hbm [shape: f32[2,2,128], index: 6, kind: output, shape index: {1}]  }
   0x1   :  { %13 = vsyncpa [#allocation7], 0 }
   0x2   :  { %14 = vsyncpa [#allocation5], 0 }
   0x3   :  { %15 = vsyncpa [#allocation10], 0  ;;  %s742_s21 = smov [#allocation3]  }
   0x4   :  { %s21_s22 = sshll.u32 %s742_s21, 4  ;;  %s22_s22 = int_to_ptr.vmem [resolvable:$true] %s21_s22 }
   0x5   :  { %s662_s23 = scalar_lea.vmem %s22_s22, 512  ;;  %p667_p1 = scmp.lt.s32.totalorder %s22_s22, %s22_s22 }
   0x6   :  { %p663_p0 = scmp.ne.s32.totalorder %s22_s22, %s662_s23  ;;  %p668_p2 = scmp.lt.s32.totalorder %s662_s23, %s662_s23 }
   0x8   :  { %p669_p3 = por %p668_p2, %p667_p1 }
   0xa   :  { %p670_p4 = pnand %p669_p3, %p663_p0 }
   0xc   :  { %673 = shalt.err (!%p670_p4)
}
   0xd   :  { %s743_s24 = smov 128   ;;  %s744_s25 = smov 8  }
   0xe   :  { %27 = dma.hbm_to_vmem [thread:$0]  %s832_s0, 512, %s22_s22, [#allocation4], %s743_s24, %s743_s24, %s744_s25  }
   0xf   :  { %s745_s28 = smov [#allocation6]  }
  0x10   :  { %s37_s29 = sshll.u32 %s745_s28, 4  ;;  %s38_s29 = int_to_ptr.vmem [resolvable:$true] %s37_s29 }
  0x11   :  { %s682_s30 = scalar_lea.vmem %s38_s29, 3072  ;;  %p687_p6 = scmp.lt.s32.totalorder %s38_s29, %s38_s29 }
  0x12   :  { %p683_p5 = scmp.ne.s32.totalorder %s38_s29, %s682_s30  ;;  %p688_p7 = scmp.lt.s32.totalorder %s682_s30, %s682_s30 }
  0x14   :  { %p689_p8 = por %p688_p7, %p687_p6 }
  0x16   :  { %p690_p9 = pnand %p689_p8, %p683_p5 }
  0x18   :  { %693 = shalt.err (!%p690_p9)
}
  0x19   :  { %43 = dma.hbm_to_vmem [thread:$0]  %s835_s3, 3072, %s38_s29, [#allocation7], %s743_s24, %s743_s24, %s744_s25  }
  0x1a   :  { %734 = dma.done.wait [#allocation4], 512  }
  0x1b   :  { %735 = vsyncadd [#allocation4], 4294966784 }
  0x1c   :  { %736 = dma.done.wait [#allocation7], 3072  }
  0x1d   :  { %737 = vsyncadd [#allocation7], 4294964224  ;;  %vm82_vm0 = vcmask 516096   ;;  %v746_v0 = vmov 0.0   ;;  %v116_v1 = vld [vmem:[#allocation6 + $0x78] sm:$0xff]  ;;  %v115_v3 = vld [vmem:[#allocation6 + $0x70] sm:$0xff] }
  0x1e   :  { %83 = vst.msk [vmem:[#allocation2] sm:$0x1] %vm82_vm0, %v746_v0  ;;  %84 = vst.msk [vmem:[#allocation2 + $0x18] sm:$0x1] %vm82_vm0, %v746_v0  ;;  %v107_v2 = vld [vmem:[#allocation6 + $0x38] sm:$0xff]  ;;  %563 = vmatprep.subr.mxu0 %v116_v1  ;;  %v106_v4 = vld [vmem:[#allocation6 + $0x30] sm:$0xff] }
  0x1f   :  { %85 = vst.msk [vmem:[#allocation2 + $0x11] sm:$0x1] %vm82_vm0, %v746_v0  ;;  %86 = vst.msk [vmem:[#allocation2 + $0x29] sm:$0x1] %vm82_vm0, %v746_v0  ;;  %585 = vmatprep.subr.mxu1 %v107_v2  ;;  %564 = vmatpush3.msra.mxu0 %v116_v1  ;;  %v114_v5 = vld [vmem:[#allocation6 + $0x68] sm:$0xff]  ;;  %v113_v7 = vld [vmem:[#allocation6 + $0x60] sm:$0xff] }
  0x20   :  { %586 = vmatpush3.msra.mxu1 %v107_v2  ;;  %v105_v6 = vld [vmem:[#allocation6 + $0x28] sm:$0xff]  ;;  %565 = vmatprep.subr.mxu0 %v115_v3  ;;  %v104_v8 = vld [vmem:[#allocation6 + $0x20] sm:$0xff]  ;;  %v112_v9 = vld [vmem:[#allocation6 + $0x58] sm:$0xff]  ;;  %vm87_vm1 = vcmask 523264   ;;  %s747_s11 = smov [#allocation8]  }
  0x21   :  { %587 = vmatprep.subr.mxu1 %v106_v4  ;;  %566 = vmatpush3.msra.mxu0 %v115_v3  ;;  %v52_v10 = vld [vmem:[#allocation3] sm:$0xff]  ;;  %v512_v11 = vld [vmem:[%s833_s1] ss:$0 sm:$0xff]  ;;  %v103_v12 = vld [vmem:[#allocation6 + $0x18] sm:$0xff]  ;;  %s483_s12 = sshll.u32 %s747_s11, 4  ;;  %s484_s12 = int_to_ptr.vmem [resolvable:$true] %s483_s12 }
  0x22   :  { %588 = vmatpush3.msra.mxu1 %v106_v4  ;;  %567 = vmatprep.subr.mxu0 %v114_v5  ;;  %v63_v13 = vmul.f32 %v512_v11, %v52_v10  ;;  %v513_v14 = vld [vmem:[%s834_s2] ss:$0 sm:$0xff]  ;;  %v53_v15 = vld [vmem:[#allocation3 + $0x8] sm:$0xff]  ;;  %v55_v21 = vld [vmem:[#allocation3 + $0x18] sm:$0xff]  ;;  %p699_p11 = scmp.lt.s32.totalorder %s484_s12, %s484_s12 }
  0x23   :  { %589 = vmatprep.subr.mxu1 %v105_v6  ;;  %568 = vmatpush3.msra.mxu0 %v114_v5  ;;  %v111_v16 = vld [vmem:[#allocation6 + $0x50] sm:$0xff]  ;;  %v64_v17 = vmul.f32 %v512_v11, %v53_v15  ;;  %v66_v24 = vmul.f32 %v512_v11, %v55_v21  ;;  %v110_v25 = vld [vmem:[#allocation6 + $0x48] sm:$0xff]  ;;  %v109_v31 = vld [vmem:[#allocation6 + $0x40] sm:$0xff] }
  0x24   :  { %590 = vmatpush3.msra.mxu1 %v105_v6  ;;  %569 = vmatprep.subr.mxu0 %v113_v7  ;;  %v102_v18 = vld [vmem:[#allocation6 + $0x10] sm:$0xff]  ;;  %v74_v19 = vadd.f32 %v513_v14, %v63_v13  ;;  %v101_v26 = vld [vmem:[#allocation6 + $0x8] sm:$0xff]  ;;  %v100_v32 = vld [vmem:[#allocation6] sm:$0xff] }
  0x25   :  { %591 = vmatprep.subr.mxu1 %v104_v8  ;;  %570 = vmatpush3.msra.mxu0 %v113_v7  ;;  %v54_v20 = vld [vmem:[#allocation3 + $0x10] sm:$0xff]  ;;  %v75_v22 = vadd.f32 %v513_v14, %v64_v17  ;;  %v77_v30 = vadd.f32 %v513_v14, %v66_v24  ;;  %v319_v35 = vld [vmem:[#allocation6 + $0xb8] sm:$0xff]  ;;  %v317_v38 = vld [vmem:[#allocation6 + $0xa8] sm:$0xff] }
  0x26   :  { %592 = vmatpush3.msra.mxu1 %v104_v8  ;;  %571 = vmatprep.subr.mxu0 %v112_v9  ;;  %v65_v23 = vmul.f32 %v512_v11, %v54_v20  ;;  %v78_v27 = vmax.f32 %v74_v19, 0.0  ;;  %v318_v36 = vld [vmem:[#allocation6 + $0xb0] sm:$0xff]  ;;  %v316_v40 = vld [vmem:[#allocation6 + $0xa0] sm:$0xff]  ;;  %v315_v41 = vld [vmem:[#allocation6 + $0x98] sm:$0xff] }
  0x27   :  { %593 = vmatprep.subr.mxu1 %v103_v12  ;;  %572 = vmatpush3.msra.mxu0 %v112_v9  ;;  %v79_v28 = vmax.f32 %v75_v22, 0.0  ;;  %v81_v34 = vmax.f32 %v77_v30, 0.0  ;;  %v314_v43 = vld [vmem:[#allocation6 + $0x90] sm:$0xff]  ;;  %v313_v45 = vld [vmem:[#allocation6 + $0x88] sm:$0xff]  ;;  %v312_v46 = vld [vmem:[#allocation6 + $0x80] sm:$0xff] }
  0x28   :  { %594 = vmatpush3.msra.mxu1 %v103_v12  ;;  %573 = vmatprep.subr.mxu0 %v111_v16  ;;  %v76_v29 = vadd.f32 %v513_v14, %v65_v23  ;;  %88 = vst.msk [vmem:[#allocation2 + $0x1] sm:$0xff] %vm87_vm1, %v78_v27  ;;  %v526_v62 = vld [vmem:[%s836_s4] ss:$0 sm:$0xff]  ;;  %s694_s4 = scalar_lea.vmem %s484_s12, 512 }
  0x29   :  { %595 = vmatprep.subr.mxu1 %v102_v18  ;;  %574 = vmatpush3.msra.mxu0 %v111_v16  ;;  %89 = vst.msk [vmem:[#allocation2 + $0x9] sm:$0xff] %vm87_vm1, %v79_v28  ;;  %91 = vst.msk [vmem:[#allocation2 + $0x21] sm:$0xff] %vm87_vm1, %v81_v34  ;;  %p695_p10 = scmp.ne.s32.totalorder %s484_s12, %s694_s4  ;;  %p700_p12 = scmp.lt.s32.totalorder %s694_s4, %s694_s4 }
  0x2a   :  { %596 = vmatpush3.msra.mxu1 %v102_v18  ;;  %575 = vmatprep.subr.mxu0 %v110_v25  ;;  %v80_v33 = vmax.f32 %v76_v29, 0.0 }
  0x2b   :  { %597 = vmatprep.subr.mxu1 %v101_v26  ;;  %576 = vmatpush3.msra.mxu0 %v110_v25  ;;  %p701_p13 = por %p700_p12, %p699_p11 }
  0x2c   :  { %598 = vmatpush3.msra.mxu1 %v101_v26  ;;  %577 = vmatprep.subr.mxu0 %v109_v31  ;;  %90 = vst.msk [vmem:[#allocation2 + $0x19] sm:$0xff] %vm87_vm1, %v80_v33 }
  0x2d   :  { %599 = vmatprep.subr.mxu1 %v100_v32  ;;  %578 = vmatpush3.msra.mxu0 %v109_v31  ;;  %p702_p0 = pnand %p701_p13, %p695_p10 }
  0x2e   :  { %579 = vmatprep.mubr.msk.f32.mxu0 %vm87_vm1, %v78_v27  ;;  %600 = vmatpush3.msra.mxu1 %v100_v32 }
  0x2f   :  { %580 = vmatmul.mubr.msk.f32.vlgmr.msra.gmra.mxu0 %vm87_vm1, %v79_v28  ;;  %607 = vmatprep.subr.mxu0 %v319_v35  ;;  %v92_v37 = vld [vmem:[#allocation2] sm:$0xff] }
  0x30   :  { %629 = vmatprep.subr.mxu1 %v319_v35  ;;  %608 = vmatpush3.msra.mxu0 %v319_v35  ;;  %v93_v39 = vld [vmem:[#allocation2 + $0x8] sm:$0xff] }
  0x31   :  { %582 = vmatprep.mubr.msk.f32.mxu0 %vm87_vm1, %v80_v33  ;;  %601 = vmatprep.mubr.msk.f32.mxu1 %vm87_vm1, %v92_v37  ;;  %v96_v47 = vld [vmem:[#allocation2 + $0x2] sm:$0xff]  ;;  %v97_v49 = vld [vmem:[#allocation2 + $0xa] sm:$0xff] }
  0x32   :  { %609 = vmatprep.subr.mxu0 %v318_v36  ;;  %602 = vmatmul.mubr.msk.f32.vlgmr.msra.gmra.mxu1 %vm87_vm1, %v93_v39  ;;  %v99_v50 = vld [vmem:[#allocation2 + $0x22] sm:$0xff] }
  0x33   :  { %610 = vmatpush3.msra.mxu0 %v318_v36  ;;  %637 = vmatpush3.msra.mxu1 %v319_v35  ;;  %v94_v42 = vld [vmem:[#allocation2 + $0x18] sm:$0xff]  ;;  %v95_v44 = vld [vmem:[#allocation2 + $0x20] sm:$0xff] }
  0x34   :  { %611 = vmatprep.subr.mxu0 %v317_v38  ;;  %630 = vmatprep.subr.mxu1 %v318_v36  ;;  %v98_v48 = vld [vmem:[#allocation2 + $0x1a] sm:$0xff] }
  0x35   :  { %612 = vmatpush3.msra.mxu0 %v317_v38  ;;  %638 = vmatpush3.msra.mxu1 %v318_v36 }
  0x36   :  { %613 = vmatprep.subr.mxu0 %v316_v40  ;;  %631 = vmatprep.subr.mxu1 %v317_v38 }
  0x37   :  { %614 = vmatpush3.msra.mxu0 %v316_v40  ;;  %639 = vmatpush3.msra.mxu1 %v317_v38 }
  0x38   :  { %615 = vmatprep.subr.mxu0 %v315_v41  ;;  %632 = vmatprep.subr.mxu1 %v316_v40 }
  0x39   :  { %604 = vmatprep.mubr.msk.f32.mxu1 %vm87_vm1, %v94_v42  ;;  %640 = vmatpush3.msra.mxu1 %v316_v40 }
  0x3a   :  { %616 = vmatpush3.msra.mxu0 %v315_v41  ;;  %633 = vmatprep.subr.mxu1 %v315_v41 }
  0x3b   :  { %583 = vmatmul.mubr.msk.f32.gmra.mxu0 %vm87_vm1, %v81_v34  ;;  %641 = vmatpush3.msra.mxu1 %v315_v41 }
  0x3c   :  { %617 = vmatprep.subr.mxu0 %v314_v43  ;;  %605 = vmatmul.mubr.msk.f32.gmra.mxu1 %vm87_vm1, %v95_v44 }
  0x3d   :  { %634 = vmatprep.subr.mxu1 %v314_v43  ;;  %618 = vmatpush3.msra.mxu0 %v314_v43 }
  0x3e   :  { %642 = vmatpush3.msra.mxu1 %v314_v43  ;;  %619 = vmatprep.subr.mxu0 %v313_v45 }
  0x3f   :  { %635 = vmatprep.subr.mxu1 %v313_v45  ;;  %620 = vmatpush3.msra.mxu0 %v313_v45 }
  0x40   :  { %643 = vmatpush3.msra.mxu1 %v313_v45  ;;  %621 = vmatprep.subr.mxu0 %v312_v46 }
  0x41   :  { %636 = vmatprep.subr.mxu1 %v312_v46  ;;  %622 = vmatpush3.msra.mxu0 %v312_v46 }
  0x42   :  { %644 = vmatpush3.msra.mxu1 %v312_v46  ;;  %623 = vmatprep.mubr.msk.f32.mxu0 %vm87_vm1, %v96_v47 }
  0x43   :  { %626 = vmatprep.mubr.msk.f32.mxu1 %vm87_vm1, %v98_v48  ;;  %624 = vmatmul.mubr.msk.f32.vlgmr.msra.gmra.mxu0 %vm87_vm1, %v97_v49 }
  0x44   :  { %627 = vmatmul.mubr.msk.f32.vlgmr.msra.gmra.mxu1 %vm87_vm1, %v99_v50 }
  0xef   :  { %v581_v51 = vpop.f32.mrf.mxu0 }
  0xf1   :  { %v195_v53 = vpop.f32.mrf.mxu0 }
  0xf2   :  { %v603_v52 = vpop.f32.mrf.mxu1 }
  0xf3   :  { %v298_v59 = vadd.f32 %v603_v52, %v581_v51 }
  0xf4   :  { %v292_v54 = vpop.f32.mrf.mxu1 }
  0xf5   :  { %v293_v0 = vadd.f32 %v292_v54, %v195_v53 }
  0xfb   :  { %v584_v55 = vpop.f32.mrf.mxu0 }
  0xfc   :  { %v606_v56 = vpop.f32.mrf.mxu1 }
  0xfd   :  { %v205_v57 = vpop.f32.mrf.mxu0  ;;  %v308_v60 = vadd.f32 %v606_v56, %v584_v55 }
  0xfe   :  { %v302_v58 = vpop.f32.mrf.mxu1 }
  0xff   :  { %v303_v1 = vadd.f32 %v302_v58, %v205_v57 }
 0x103   :  { %v625_v61 = vpop.f32.mrf.mxu0 }
 0x104   :  { %v628_v63 = vpop.f32.mrf.mxu1  ;;  %v418_v2 = vadd.f32 %v625_v61, %v298_v59 }
 0x105   :  { %v420_v3 = vadd.f32 %v628_v63, %v308_v60  ;;  %v398_v4 = vpop.f32.mrf.mxu0 }
 0x106   :  { %v408_v5 = vpop.f32.mrf.mxu1  ;;  %v429_v6 = vadd.f32 %v526_v62, %v418_v2  ;;  %v417_v8 = vadd.f32 %v398_v4, %v293_v0 }
 0x107   :  { %v431_v7 = vadd.f32 %v526_v62, %v420_v3  ;;  %v419_v9 = vadd.f32 %v408_v5, %v303_v1 }
 0x108   :  { %433 = vst [vmem:[#allocation8 + $0x8] sm:$0xff] %v429_v6  ;;  %v428_v10 = vadd.f32 %v526_v62, %v417_v8 }
 0x109   :  { %435 = vst [vmem:[#allocation8 + $0x18] sm:$0xff] %v431_v7  ;;  %v430_v11 = vadd.f32 %v526_v62, %v419_v9 }
 0x10a   :  { %432 = vst [vmem:[#allocation8] sm:$0xff] %v428_v10  ;;  %v436_v12 = vadd.f32 %v429_v6, %v428_v10 }
 0x10b   :  { %434 = vst [vmem:[#allocation8 + $0x10] sm:$0xff] %v430_v11  ;;  %v443_v13 = vadd.f32 %v431_v7, %v430_v11 }
 0x10c   :  { %705 = shalt.err (!%p702_p0)
}
 0x10d   :  { %489 = dma.vmem_to_hbm [thread:$0]  %s484_s12, 512, %s837_s5, [#allocation5], %s743_s24, %s743_s24, %s744_s25   ;;  %v437_v14 = vrot.slane %v436_v12, 4  ;;  %v444_v15 = vrot.slane %v443_v13, 4 }
 0x10e   :  { %s748_s5 = smov [#allocation9]  }
 0x10f   :  { %v438_v16 = vadd.f32 %v437_v14, %v436_v12  ;;  %v445_v17 = vadd.f32 %v444_v15, %v443_v13  ;;  %s495_s15 = sshll.u32 %s748_s5, 4  ;;  %s496_s15 = int_to_ptr.vmem [resolvable:$true] %s495_s15 }
 0x110   :  { %s714_s16 = scalar_lea.vmem %s496_s15, 64  ;;  %p719_p2 = scmp.lt.s32.totalorder %s496_s15, %s496_s15 }
 0x111   :  { %v439_v18 = vrot.slane %v438_v16, 2  ;;  %v446_v19 = vrot.slane %v445_v17, 2  ;;  %p715_p1 = scmp.ne.s32.totalorder %s496_s15, %s714_s16  ;;  %p720_p3 = scmp.lt.s32.totalorder %s714_s16, %s714_s16 }
 0x113   :  { %v440_v20 = vadd.f32 %v439_v18, %v438_v16  ;;  %v447_v21 = vadd.f32 %v446_v19, %v445_v17  ;;  %p721_p4 = por %p720_p3, %p719_p2 }
 0x115   :  { %v441_v22 = vrot.slane %v440_v20, 1  ;;  %v448_v23 = vrot.slane %v447_v21, 1  ;;  %p722_p5 = pnand %p721_p4, %p715_p1 }
 0x117   :  { %v442_v24 = vadd.f32 %v441_v22, %v440_v20  ;;  %v449_v25 = vadd.f32 %v448_v23, %v447_v21 }
 0x119   :  { %v450_v26 = vmul.f32 0.0625, %v442_v24  ;;  %474 = vst [vmem:[#allocation9] sm:$0x1] %v442_v24  ;;  %v451_v27 = vmul.f32 0.0625, %v449_v25  ;;  %475 = vst [vmem:[#allocation9 + $0x2] sm:$0x1] %v449_v25 }
 0x11b   :  { %v452_v28 = vsub.f32 %v428_v10, %v450_v26  ;;  %v453_v29 = vsub.f32 %v429_v6, %v450_v26  ;;  %v454_v30 = vsub.f32 %v430_v11, %v451_v27  ;;  %v455_v31 = vsub.f32 %v431_v7, %v451_v27 }
 0x11d   :  { %v456_v32 = vmul.f32 %v452_v28, %v452_v28  ;;  %v457_v33 = vmul.f32 %v453_v29, %v453_v29  ;;  %v458_v34 = vmul.f32 %v454_v30, %v454_v30  ;;  %v459_v35 = vmul.f32 %v455_v31, %v455_v31 }
 0x11f   :  { %v460_v36 = vadd.f32 %v457_v33, %v456_v32  ;;  %v467_v37 = vadd.f32 %v459_v35, %v458_v34 }
 0x121   :  { %v461_v38 = vrot.slane %v460_v36, 4  ;;  %v468_v39 = vrot.slane %v467_v37, 4 }
 0x123   :  { %v462_v40 = vadd.f32 %v461_v38, %v460_v36  ;;  %v469_v41 = vadd.f32 %v468_v39, %v467_v37 }
 0x125   :  { %v463_v42 = vrot.slane %v462_v40, 2  ;;  %v470_v43 = vrot.slane %v469_v41, 2 }
 0x127   :  { %v464_v44 = vadd.f32 %v463_v42, %v462_v40  ;;  %v471_v45 = vadd.f32 %v470_v43, %v469_v41 }
 0x129   :  { %v465_v46 = vrot.slane %v464_v44, 1  ;;  %v472_v47 = vrot.slane %v471_v45, 1 }
 0x12b   :  { %v466_v48 = vadd.f32 %v465_v46, %v464_v44  ;;  %v473_v49 = vadd.f32 %v472_v47, %v471_v45 }
 0x12d   :  { %476 = vst [vmem:[#allocation9 + $0x1] sm:$0x1] %v466_v48  ;;  %477 = vst [vmem:[#allocation9 + $0x3] sm:$0x1] %v473_v49 }
 0x12e   :  { %725 = shalt.err (!%p722_p5)
}
 0x12f   :  { %s749_s17 = smov 32   ;;  %s750_s18 = smov 2  }
 0x130   :  { %501 = dma.vmem_to_hbm [thread:$0]  %s496_s15, 64, %s838_s6, [#allocation10], %s749_s17, %s749_s17, %s750_s18  }
 0x131   :  { %738 = dma.done.wait [#allocation5], 512  }
 0x132   :  { %739 = vsyncadd [#allocation5], 4294966784 }
 0x133   :  { %740 = dma.done.wait [#allocation10], 64  }
 0x134   :  { %741 = vsyncadd [#allocation10], 4294967232 }
 0x135   :  { %508 = vsyncpa [#allocation4], 1 }
 0x136   :  { %509 = vsyncpa [#allocation7], 1 }
 0x137   :  { %510 = vsyncpa [#allocation5], 1 }
 0x138   :  { %511 = vsyncpa [#allocation10], 1 }

</bundles_post_ra>
